<compile_context>
chip_gen: v7x
topology: tpu7x:2x2x1
jax: 0.10.0
libtpu: 0.0.40
codegen_flags: <defaults>
</compile_context>

<pallas_src>
import functools

import jax
import jax.numpy as jnp
from jax.experimental import pallas as pl
from jax.experimental.pallas import tpu as pltpu

HIDDEN_SIZE = 32
_LANE = 128
_SUBLANE = 8


def _cdiv(a, b):
    return -(-a // b)


def _round_up(x, m):
    return _cdiv(x, m) * m


def _mlp_kernel(x_ref, w1_ref, b1_ref, w2_ref, b2_ref, o_ref, acc_ref,
                *, compute_dtype):
    """Grid = (batch tiles, K tiles over D_in); K is the last (reduction) axis."""
    k = pl.program_id(1)

    @pl.when(k == 0)
    def _init():
        acc_ref[...] = jnp.zeros_like(acc_ref)

    # fc1 partial contraction over this D_in tile.  Tiles are cast to the MXU
    # compute dtype here (free on the VPU; avoids a wrapper-side HBM pass).
    acc_ref[...] += jnp.dot(
        x_ref[...].astype(compute_dtype),
        w1_ref[...].astype(compute_dtype),
        preferred_element_type=jnp.float32,
    )

    @pl.when(k == pl.num_programs(1) - 1)
    def _epilogue():
        # bias + ReLU in f32
        h = jnp.maximum(acc_ref[...] + b1_ref[...], 0.0)
        # fc2 on MXU, f32 accumulate, then bias + sigmoid
        y = jnp.dot(
            h.astype(compute_dtype),
            w2_ref[...].astype(compute_dtype),
            preferred_element_type=jnp.float32,
        ) + b2_ref[...]
        o_ref[...] = jax.nn.sigmoid(y).astype(o_ref.dtype)


@functools.partial(jax.jit, static_argnames=("compute_dtype", "tb", "tk"))
def gradient_feature_selector(x, w1, b1, w2, b2, *,
                              compute_dtype=jnp.bfloat16, tb=256, tk=2048):
    """Pallas forward of sigmoid(relu(x @ w1 + b1) @ w2 + b2).

    x : (..., D_in)    w1: (D_in, H)   b1: (1, H)
    w2: (H, D_out)     b2: (1, D_out)
    Weights are stored pre-transposed ((in, out)) relative to nn.Linear.
    """
    cd = jnp.dtype(compute_dtype)
    lead_shape = x.shape[:-1]
    D_in = x.shape[-1]
    x2 = x.reshape(-1, D_in)          # nn.Linear flattens leading dims
    B = x2.shape[0]
    H = w1.shape[1]
    D_out = w2.shape[1]
    out_dtype = x.dtype

    # ---- adaptive tile sizes (minimise zero padding) ----------------------
    num_k = max(1, _cdiv(D_in, tk))
    TK = _round_up(_cdiv(D_in, num_k), _LANE)
    D_in_pad = num_k * TK
    num_b = max(1, _cdiv(B, tb))
    TB = _round_up(_cdiv(B, num_b), _SUBLANE)
    B_pad = num_b * TB

    # ---- pad only when required (zero padding is exact for this MLP).
    # If a pad copy is unavoidable, fold the compute-dtype cast into it;
    # otherwise pass operands untouched and cast per-tile inside the kernel.
    pad_b, pad_k = B_pad - B, D_in_pad - D_in
    xp = (jnp.pad(x2.astype(cd), ((0, pad_b), (0, pad_k)))
          if (pad_b or pad_k) else x2)
    w1p = jnp.pad(w1.astype(cd), ((0, pad_k), (0, 0))) if pad_k else w1
    b1p = b1.astype(jnp.float32)
    b2p = b2.astype(jnp.float32)

    grid = (num_b, num_k)

    grid_spec = pltpu.PrefetchScalarGridSpec(
        num_scalar_prefetch=0,
        grid=grid,
        in_specs=[
            pl.BlockSpec((TB, TK), lambda i, k: (i, k)),      # x tile
            pl.BlockSpec((TK, H), lambda i, k: (k, 0)),       # w1 K-tile
            pl.BlockSpec((1, H), lambda i, k: (0, 0)),        # b1 (resident)
            pl.BlockSpec((H, D_out), lambda i, k: (0, 0)),    # w2 (resident)
            pl.BlockSpec((1, D_out), lambda i, k: (0, 0)),    # b2 (resident)
        ],
        out_specs=pl.BlockSpec((TB, D_out), lambda i, k: (i, 0)),
        scratch_shapes=[pltpu.VMEM((TB, H), jnp.float32)],    # fc1 accumulator
    )

    # ---- VMEM budget & cost hint ------------------------------------------
    x_isz = jnp.dtype(xp.dtype).itemsize
    w1_isz = jnp.dtype(w1p.dtype).itemsize
    o_isz = jnp.dtype(out_dtype).itemsize
    vmem_est = (2 * TB * TK * x_isz            # x double buffer
                + 2 * TK * H * w1_isz          # w1 double buffer
                + 2 * H * D_out * w2.dtype.itemsize
                + 2 * TB * D_out * o_isz
                + TB * H * 4                   # accumulator scratch
                + 4 * (H + D_out) * 4)         # biases
    vmem_limit = int(min(max(2 * vmem_est, 8 * 1024 * 1024), 48 * 1024 * 1024))

    cost = pl.CostEstimate(
        flops=2 * B_pad * D_in_pad * H + 2 * B_pad * H * D_out,
        transcendentals=B_pad * D_out,
        bytes_accessed=(xp.size * x_isz + w1p.size * w1_isz
                        + w2.size * w2.dtype.itemsize
                        + b1p.size * 4 + b2p.size * 4
                        + B_pad * D_out * o_isz),
    )

    out_padded = pl.pallas_call(
        functools.partial(_mlp_kernel, compute_dtype=cd),
        out_shape=jax.ShapeDtypeStruct((B_pad, D_out), out_dtype),
        grid_spec=grid_spec,
        compiler_params=pltpu.CompilerParams(
            dimension_semantics=("parallel", "arbitrary"),
            vmem_limit_bytes=vmem_limit,
        ),
        cost_estimate=cost,
    )(xp, w1p, b1p, w2, b2p)

    return out_padded[:B, :].reshape(lead_shape + (D_out,))


def init_params(key, input_size, output_size, hidden_size=HIDDEN_SIZE):
    """Deterministic init mimicking nn.Linear default (uniform +/- 1/sqrt(fan_in)).

    Weights stored pre-transposed as (in_features, out_features).
    """
    k1, k2, k3, k4 = jax.random.split(key, 4)
    bound1 = 1.0 / (input_size ** 0.5)
    bound2 = 1.0 / (hidden_size ** 0.5)
    w1 = jax.random.uniform(k1, (input_size, hidden_size), jnp.float32, -bound1, bound1)
    b1 = jax.random.uniform(k2, (1, hidden_size), jnp.float32, -bound1, bound1)
    w2 = jax.random.uniform(k3, (hidden_size, output_size), jnp.float32, -bound2, bound2)
    b2 = jax.random.uniform(k4, (1, output_size), jnp.float32, -bound2, bound2)
    return w1, b1, w2, b2


def _reference(x, w1, b1, w2, b2):
    return jax.nn.sigmoid(jnp.maximum(x @ w1 + b1, 0.0) @ w2 + b2)


if __name__ == "__main__":
    key = jax.random.PRNGKey(0)
    kx1, kp1, kx2, kp2 = jax.random.split(key, 4)

    # --- case 1: tiny shapes that require padding (D_in 16 -> 128) ---------
    batch, input_size, output_size = 8, 16, 4
    x = jax.random.normal(kx1, (batch, input_size), jnp.float32)
    w1, b1, w2, b2 = init_params(kp1, input_size, output_size)
    ref = _reference(x, w1, b1, w2, b2)

    out_f32 = jax.block_until_ready(
        gradient_feature_selector(x, w1, b1, w2, b2, compute_dtype=jnp.float32))
    assert out_f32.shape == (batch, output_size)
    assert jnp.allclose(out_f32, ref, atol=1e-5, rtol=1e-5)

    out_bf16 = jax.block_until_ready(
        gradient_feature_selector(x, w1, b1, w2, b2, compute_dtype=jnp.bfloat16))
    assert out_bf16.shape == (batch, output_size)
    assert jnp.allclose(out_bf16, ref, atol=2e-2, rtol=2e-2)

    # --- case 2: aligned shapes (no padding -> in-kernel cast path) and a
    # 3-D input exercising nn.Linear's leading-dim flattening ---------------
    lead0, lead1, input_size2, output_size2 = 2, 8, 256, 4
    x2 = jax.random.normal(kx2, (lead0, lead1, input_size2), jnp.float32)
    w1b, b1b, w2b, b2b = init_params(kp2, input_size2, output_size2)
    ref2 = _reference(x2, w1b, b1b, w2b, b2b)

    out2 = jax.block_until_ready(
        gradient_feature_selector(x2, w1b, b1b, w2b, b2b, compute_dtype=jnp.float32))
    assert out2.shape == (lead0, lead1, output_size2)
    assert jnp.allclose(out2, ref2, atol=1e-5, rtol=1e-5)

    print("KERNEL_OK")
</pallas_src>

<mosaic_0001>
module attributes {stable_mosaic.version = 11 : i64} {
  func.func @_mlp_kernel(%arg0: i32, %arg1: i32, %arg2: memref<8x128xf32, #tpu.memory_space<vmem>>, %arg3: memref<128x32xf32, #tpu.memory_space<vmem>>, %arg4: memref<1x32xf32, #tpu.memory_space<vmem>>, %arg5: memref<32x4xf32, #tpu.memory_space<vmem>>, %arg6: memref<1x4xf32, #tpu.memory_space<vmem>>, %arg7: memref<8x4xf32, #tpu.memory_space<vmem>>, %arg8: memref<8x32xf32, #tpu.memory_space<vmem>>) attributes {dimension_semantics = [#tpu.dimension_semantics<parallel>, #tpu.dimension_semantics<arbitrary>], iteration_bounds = array<i64: 1, 1>, scalar_prefetch = 0 : i64, scratch_operands = 1 : i64, tpu.core_type = #tpu.core_type<tc>, window_params = [{transform_indices = @transform_0, window_bounds = array<i64: 8, 128>}, {transform_indices = @transform_1, window_bounds = array<i64: 128, 32>}, {pipeline_mode = #tpu.pipeline_mode<synchronous>, transform_indices = @transform_2, window_bounds = array<i64: 1, 32>}, {pipeline_mode = #tpu.pipeline_mode<synchronous>, transform_indices = @transform_3, window_bounds = array<i64: 32, 4>}, {pipeline_mode = #tpu.pipeline_mode<synchronous>, transform_indices = @transform_4, window_bounds = array<i64: 1, 4>}, {transform_indices = @transform_5, window_bounds = array<i64: 8, 4>}]} {
    %c0_i32 = arith.constant 0 : i32
    %0 = arith.cmpi eq, %arg1, %c0_i32 : i32
    %1 = arith.extui %0 : i1 to i32
    %c0_i32_0 = arith.constant 0 : i32
    %2 = arith.cmpi ne, %1, %c0_i32_0 : i32
    scf.if %2 {
      %cst_10 = arith.constant 0.000000e+00 : f32
      %12 = vector.broadcast %cst_10 : f32 to vector<8x32xf32>
      %c0_11 = arith.constant 0 : index
      %c0_12 = arith.constant 0 : index
      %13 = vector.load %arg8[%c0_11, %c0_12] : memref<8x32xf32, #tpu.memory_space<vmem>>, vector<8x32xf32>
      tpu.vector_store %arg8[%c0_11, %c0_12], %12 {strides = array<i32>} : memref<8x32xf32, #tpu.memory_space<vmem>>, vector<8x32xf32>,
    } else {
    }
    %c0 = arith.constant 0 : index
    %c0_1 = arith.constant 0 : index
    %3 = vector.load %arg8[%c0, %c0_1] : memref<8x32xf32, #tpu.memory_space<vmem>>, vector<8x32xf32>
    %c0_2 = arith.constant 0 : index
    %c0_3 = arith.constant 0 : index
    %4 = vector.load %arg2[%c0_2, %c0_3] : memref<8x128xf32, #tpu.memory_space<vmem>>, vector<8x128xf32>
    %c0_4 = arith.constant 0 : index
    %c0_5 = arith.constant 0 : index
    %5 = vector.load %arg3[%c0_4, %c0_5] : memref<128x32xf32, #tpu.memory_space<vmem>>, vector<128x32xf32>
    %cst = arith.constant dense<0.000000e+00> : vector<8x32xf32>
    %6 = tpu.matmul %4, %5, %cst {dimension_numbers = #tpu.dot_dimension_numbers<[1], [0], [0], [1], [0, 0, 1, 1], [], []>} : vector<8x128xf32>, vector<128x32xf32>, vector<8x32xf32> -> vector<8x32xf32>
    %7 = arith.addf %3, %6 : vector<8x32xf32>
    %c0_6 = arith.constant 0 : index
    %c0_7 = arith.constant 0 : index
    %8 = vector.load %arg8[%c0_6, %c0_7] : memref<8x32xf32, #tpu.memory_space<vmem>>, vector<8x32xf32>
    tpu.vector_store %arg8[%c0_6, %c0_7], %7 {strides = array<i32>} : memref<8x32xf32, #tpu.memory_space<vmem>>, vector<8x32xf32>,
    %c0_i32_8 = arith.constant 0 : i32
    %9 = arith.cmpi eq, %arg1, %c0_i32_8 : i32
    %10 = arith.extui %9 : i1 to i32
    %c0_i32_9 = arith.constant 0 : i32
    %11 = arith.cmpi ne, %10, %c0_i32_9 : i32
    scf.if %11 {
      %c0_10 = arith.constant 0 : index
      %c0_11 = arith.constant 0 : index
      %12 = vector.load %arg8[%c0_10, %c0_11] : memref<8x32xf32, #tpu.memory_space<vmem>>, vector<8x32xf32>
      %c0_12 = arith.constant 0 : index
      %c0_13 = arith.constant 0 : index
      %13 = vector.load %arg4[%c0_12, %c0_13] : memref<1x32xf32, #tpu.memory_space<vmem>>, vector<1x32xf32>
      %14 = vector.broadcast %13 : vector<1x32xf32> to vector<8x32xf32>
      %15 = arith.addf %12, %14 : vector<8x32xf32>
      %cst_14 = arith.constant 0.000000e+00 : f32
      %16 = vector.broadcast %cst_14 : f32 to vector<8x32xf32>
      %17 = arith.maximumf %15, %16 : vector<8x32xf32>
      %c0_15 = arith.constant 0 : index
      %c0_16 = arith.constant 0 : index
      %18 = vector.load %arg5[%c0_15, %c0_16] : memref<32x4xf32, #tpu.memory_space<vmem>>, vector<32x4xf32>
      %cst_17 = arith.constant dense<0.000000e+00> : vector<8x4xf32>
      %19 = tpu.matmul %17, %18, %cst_17 {dimension_numbers = #tpu.dot_dimension_numbers<[1], [0], [0], [1], [0, 0, 1, 1], [], []>} : vector<8x32xf32>, vector<32x4xf32>, vector<8x4xf32> -> vector<8x4xf32>
      %c0_18 = arith.constant 0 : index
      %c0_19 = arith.constant 0 : index
      %20 = vector.load %arg6[%c0_18, %c0_19] : memref<1x4xf32, #tpu.memory_space<vmem>>, vector<1x4xf32>
      %21 = vector.broadcast %20 : vector<1x4xf32> to vector<8x4xf32>
      %22 = arith.addf %19, %21 : vector<8x4xf32>
      %23 = arith.negf %22 : vector<8x4xf32>
      %24 = math.exp %23 : vector<8x4xf32>
      %cst_20 = arith.constant 1.000000e+00 : f32
      %25 = vector.broadcast %cst_20 : f32 to vector<8x4xf32>
      %26 = arith.addf %25, %24 : vector<8x4xf32>
      %27 = arith.divf %25, %26 : vector<8x4xf32>
      %c0_21 = arith.constant 0 : index
      %c0_22 = arith.constant 0 : index
      %28 = vector.load %arg7[%c0_21, %c0_22] : memref<8x4xf32, #tpu.memory_space<vmem>>, vector<8x4xf32>
      tpu.vector_store %arg7[%c0_21, %c0_22], %27 {strides = array<i32>} : memref<8x4xf32, #tpu.memory_space<vmem>>, vector<8x4xf32>,
    } else {
    }
    return
  }
  func.func @transform_0(%arg0: i32, %arg1: i32) -> (i32, i32) {
    %c0_i32 = arith.constant 0 : i32
    return %arg0, %arg1 : i32, i32
  }
  func.func @transform_1(%arg0: i32, %arg1: i32) -> (i32, i32) {
    %c0_i32 = arith.constant 0 : i32
    %c0_i32_0 = arith.constant 0 : i32
    return %arg1, %c0_i32 : i32, i32
  }
  func.func @transform_2(%arg0: i32, %arg1: i32) -> (i32, i32) {
    %c0_i32 = arith.constant 0 : i32
    %c0_i32_0 = arith.constant 0 : i32
    %c0_i32_1 = arith.constant 0 : i32
    return %c0_i32, %c0_i32_0 : i32, i32
  }
  func.func @transform_3(%arg0: i32, %arg1: i32) -> (i32, i32) {
    %c0_i32 = arith.constant 0 : i32
    %c0_i32_0 = arith.constant 0 : i32
    %c0_i32_1 = arith.constant 0 : i32
    return %c0_i32, %c0_i32_0 : i32, i32
  }
  func.func @transform_4(%arg0: i32, %arg1: i32) -> (i32, i32) {
    %c0_i32 = arith.constant 0 : i32
    %c0_i32_0 = arith.constant 0 : i32
    %c0_i32_1 = arith.constant 0 : i32
    return %c0_i32, %c0_i32_0 : i32, i32
  }
  func.func @transform_5(%arg0: i32, %arg1: i32) -> (i32, i32) {
    %c0_i32 = arith.constant 0 : i32
    %c0_i32_0 = arith.constant 0 : i32
    return %arg0, %c0_i32 : i32, i32
  }
}

</mosaic_0001>

<bundles_post_ra>
// kernel: gradient_feature_selector.1
= control target key start
LH: loop header
LB: loop body
LE: loop exit
PB: predicated region body
PF: predicated region fallthrough
CT: control target
= control target key end

     0   :  { %vm24_vm0 = vcmask 261120   ;;  %v335_v0 = vmov 0.0|0.0   ;;  %vm336_vm1 = vmmov 0   ;;  %v337_v4 = vmov 0.0   ;;  %s443_s1 = inlined_call_operand.vmem [shape: f32[128,32], index: 1, kind: input, shape index: {}]   ;;  %s444_s0 = inlined_call_operand.vmem [shape: f32[8,128], index: 0, kind: input, shape index: {}]   ;;  %s445_s3 = inlined_call_operand.vmem [shape: f32[32,4], index: 3, kind: input, shape index: {}]   ;;  %s446_s2 = inlined_call_operand.vmem [shape: f32[1,32], index: 2, kind: input, shape index: {}]   ;;  %s447_s4 = inlined_call_operand.vmem [shape: f32[1,4], index: 4, kind: input, shape index: {}]   ;;  %s448_s5 = inlined_call_operand.vmem [shape: f32[8,4], index: 5, kind: output, shape index: {}]  }
   0x1   :  { %298 = vmatprep.subr.bf16.mxu0 %v335_v0  ;;  %v28_v1 = vld [vmem:[%s443_s1] sm:$0xff]  ;;  %v29_v2 = vld [vmem:[%s443_s1 + $0x8] sm:$0xff]  ;;  %v30_v3 = vld [vmem:[%s443_s1 + $0x10] sm:$0xff]  ;;  %284 = vmatprep.mubr.msk.f32.mxu0 %vm336_vm1, %v337_v4  ;;  %25 = vst.msk [vmem:[#allocation2] sm:$0xff] %vm24_vm0, %v337_v4  ;;  %vm220_vm2 = vcmask 31744  }
   0x2   :  { %v299_v5 = vpack.c.bf16 %v29_v2, %v28_v1  ;;  %v31_v6 = vld [vmem:[%s443_s1 + $0x18] sm:$0xff]  ;;  %322 = vmatprep.subr.bf16.mxu1 %v335_v0  ;;  %295 = vmatprep.mubr.msk.f32.mxu1 %vm336_vm1, %v337_v4  ;;  %v32_v8 = vld [vmem:[%s443_s1 + $0x20] sm:$0xff]  ;;  %v33_v9 = vld [vmem:[%s443_s1 + $0x28] sm:$0xff] }
   0x3   :  { %v302_v7 = vpack.c.bf16 %v31_v6, %v30_v3  ;;  %v305_v10 = vpack.c.bf16 %v33_v9, %v32_v8  ;;  %v34_v11 = vld [vmem:[%s443_s1 + $0x30] sm:$0xff]  ;;  %v35_v12 = vld [vmem:[%s443_s1 + $0x38] sm:$0xff]  ;;  %v36_v14 = vld [vmem:[%s443_s1 + $0x40] sm:$0xff] }
   0x4   :  { %300 = vmatpush3.bf16.msra.mxu0 %v299_v5  ;;  %v308_v13 = vpack.c.bf16 %v35_v12, %v34_v11  ;;  %v37_v15 = vld [vmem:[%s443_s1 + $0x48] sm:$0xff]  ;;  %v38_v17 = vld [vmem:[%s443_s1 + $0x50] sm:$0xff]  ;;  %v39_v18 = vld [vmem:[%s443_s1 + $0x58] sm:$0xff] }
   0x5   :  { %301 = vmatprep.subr.bf16.mxu0 %v335_v0  ;;  %v311_v16 = vpack.c.bf16 %v37_v15, %v36_v14  ;;  %v314_v19 = vpack.c.bf16 %v39_v18, %v38_v17  ;;  %v40_v20 = vld [vmem:[%s443_s1 + $0x60] sm:$0xff]  ;;  %v41_v21 = vld [vmem:[%s443_s1 + $0x68] sm:$0xff]  ;;  %v42_v23 = vld [vmem:[%s443_s1 + $0x70] sm:$0xff] }
   0x6   :  { %v317_v22 = vpack.c.bf16 %v41_v21, %v40_v20  ;;  %v43_v24 = vld [vmem:[%s443_s1 + $0x78] sm:$0xff]  ;;  %v27_v26 = vld [vmem:[%s444_s0] sm:$0xff]  ;;  %v131_v28 = vld [vmem:[%s445_s3 + $0x8] sm:$0xff] }
   0x7   :  { %v320_v25 = vpack.c.bf16 %v43_v24, %v42_v23  ;;  %v130_v27 = vld [vmem:[%s445_s3] sm:$0xff]  ;;  %v132_v29 = vld [vmem:[%s445_s3 + $0x10] sm:$0xff]  ;;  %v133_v31 = vld [vmem:[%s445_s3 + $0x18] sm:$0xff] }
   0x8   :  { %303 = vmatpush3.bf16.msra.mxu0 %v302_v7  ;;  %v323_v30 = vpack.c.bf16 %v131_v28, %v130_v27  ;;  %v326_v32 = vpack.c.bf16 %v133_v31, %v132_v29  ;;  %v26_v33 = vld [vmem:[#allocation2] sm:$0xff]  ;;  %v226_v37 = vld [vmem:[%s446_s2] ss:$0 sm:$0xff] }
   0x9   :  { %304 = vmatprep.subr.bf16.mxu0 %v335_v0  ;;  %v227_v41 = vld [vmem:[%s447_s4] ss:$0 sm:$0xff] }
   0xa   :  { %324 = vmatpush3.bf16.msra.mxu1 %v323_v30 }
   0xb   :  { %325 = vmatprep.subr.bf16.mxu1 %v335_v0 }
   0xc   :  { %306 = vmatpush3.bf16.msra.mxu0 %v305_v10 }
   0xd   :  { %307 = vmatprep.subr.bf16.mxu0 %v335_v0 }
   0xe   :  { %327 = vmatpush3.bf16.msra.mxu1 %v326_v32 }
  0x10   :  { %309 = vmatpush3.bf16.msra.mxu0 %v308_v13 }
  0x11   :  { %310 = vmatprep.subr.bf16.mxu0 %v335_v0 }
  0x14   :  { %312 = vmatpush3.bf16.msra.mxu0 %v311_v16 }
  0x15   :  { %313 = vmatprep.subr.bf16.mxu0 %v335_v0 }
  0x18   :  { %315 = vmatpush3.bf16.msra.mxu0 %v314_v19 }
  0x19   :  { %316 = vmatprep.subr.bf16.mxu0 %v335_v0 }
  0x1c   :  { %318 = vmatpush3.bf16.msra.mxu0 %v317_v22 }
  0x1d   :  { %319 = vmatprep.subr.bf16.mxu0 %v335_v0 }
  0x20   :  { %321 = vmatpush3.bf16.msra.mxu0 %v320_v25 }
  0x23   :  { %285 = vmatmul.mubr.f32.vlgmr.msra.gmra.mrb[0].mxu0 %v27_v26 }
  0xf6   :  { %v110_v34 = vpop.f32.mrb[0].mxu0 }
  0xf7   :  { %v114_v35 = vadd.f32 %v110_v34, %v26_v33  ;;  %v286_v36 = vpop.f32.mrb[1].mxu0 }
  0xf9   :  { %116 = vst.msk [vmem:[#allocation2] sm:$0xff] %vm24_vm0, %v114_v35 }
 0x100   :  { %v120_v38 = vld [vmem:[#allocation2] sm:$0xff] }
 0x101   :  { %v128_v39 = vadd.f32 %v226_v37, %v120_v38 }
 0x103   :  { %v129_v40 = vmax.f32 %v128_v39, 0.0 }
 0x105   :  { %296 = vmatmul.mubr.msk.f32.vlgmr.msra.gmra.mrb[0].mxu1 %vm24_vm0, %v129_v40 }
 0x1d8   :  { %v210_v42 = vpop.f32.mrb[0].mxu1 }
 0x1d9   :  { %v211_v43 = vadd.f32 %v227_v41, %v210_v42  ;;  %v297_v44 = vpop.f32.mrb[1].mxu1 }
 0x1db   :  { %v229_v45 = vmul.f32 -1.442695, %v211_v43 }
 0x1dd   :  { %331 = vpow2.f32 %v229_v45 }
 0x1e7   :  { %v332_v46 = vpop.eup %331 }
 0x1e8   :  { %v217_v47 = vadd.f32 1.0, %v332_v46 }
 0x1ea   :  { %333 = vrcp.f32 %v217_v47 }
 0x1f4   :  { %v334_v48 = vpop.eup %333 }
 0x1f5   :  { %221 = vst.msk [vmem:[%s448_s5] sm:$0xff] %vm220_vm2, %v334_v48 }

</bundles_post_ra>
